<compile_context>
chip_gen: v6e
topology: v6e:2x2x1
jax: 0.10.0
libtpu: 0.0.40
codegen_flags: <defaults>
</compile_context>

<pallas_src>
import jax
import jax.numpy as jnp
from jax.experimental import pallas as pl
from jax.experimental.pallas import tpu as pltpu


def _linsvm_kernel(xt_ref, w1_ref, b1_ref, w2_ref, b2_ref, w3_ref, b3_ref, o_ref):
    # xt_ref: [D, TB] bf16 (batch on lanes); weights are pre-transposed & BN-folded.
    xt = xt_ref[...]

    # fc1 (+ folded BN1) + ReLU; bf16 down-cast fused into the same epilogue pass.
    # (dropout1 = identity in eval mode)
    h1 = jnp.dot(w1_ref[...], xt, preferred_element_type=jnp.float32)      # [H, TB] f32
    h1b = jnp.maximum(h1 + b1_ref[...], 0.0).astype(jnp.bfloat16)          # [H, TB] bf16

    # fc2 (+ folded BN2) + ReLU; fc3 weight multiply folded into the same pass.
    # (dropout2 = identity in eval mode)
    h2 = jnp.dot(w2_ref[...], h1b, preferred_element_type=jnp.float32)     # [H, TB] f32
    h2w = jnp.maximum(h2 + b2_ref[...], 0.0) * w3_ref[...]                 # [H, TB] f32

    # fc3: lane-dense [1, TB] output row via XLU sublane reduce (kept off the MXU).
    # Scalar bias comes from SMEM.
    o_ref[...] = jnp.sum(h2w, axis=0, keepdims=True) + b3_ref[0]


def _num_tensorcores():
    """Best-effort detection of TensorCores per device (v7x has 2, v5e/v6e have 1)."""
    try:
        d = jax.devices()[0]
        kind = (getattr(d, "device_kind", "") or "").lower()
        if "v7" in kind:
            return 2
        nc = getattr(d, "num_cores", None)
        if isinstance(nc, int) and nc >= 2:
            return 2
    except Exception:
        pass
    return 1


def _pick_block_b(B, num_cores, max_block=8192):
    # Batch lives on the lane axis, so a block must be the full batch (B <= 128)
    # or a multiple of 128.
    if B <= 128:
        return B
    if num_cores >= 2:
        # Guarantee >=2 grid blocks so the "parallel" axis shards across both TensorCores.
        half = max(128, (pl.cdiv(B, 2) // 128) * 128)
        return min(half, max_block)
    # Single-TC chips: largest block (fewest grid steps) within the VMEM budget.
    if B < 256:
        return 128
    return min(max_block, (B // 256) * 256)


def _vmem_limit_bytes(block_b, D, H, O):
    # Per batch column (post-fusion): h1 f32 (4H) + h1 bf16 (2H) + h2/h2w f32 (4H)
    # + double-buffered x column (2 * 2D bf16) + double-buffered out (2 * 4O).
    per_col = 10 * H + 4 * D + 8 * O
    # Weights/biases (double-buffered by BlockSpec) + slack for compiler scratch.
    fixed = 2 * (H * D * 2 + H * H * 2 + 2 * H * 4 + H * O * 4) + (2 << 20)
    est = block_b * per_col + fixed
    # 2x safety margin; never below the v6e/v7x default (32 MiB), never above 56 MiB
    # (stay under v7x's 64 MiB physical VMEM).
    return int(min(max(2 * est, 32 << 20), 56 << 20))


def linsvm_forward(x, params, *, block_b=None):
    """x: [B, D] float32. Returns squeeze(fc3(...)), matching the PyTorch module."""
    B, D = x.shape
    H = params["w1"].shape[1]
    O = params["w3"].shape[1]

    if block_b is None:
        block_b = _pick_block_b(B, _num_tensorcores())
    assert block_b == B or block_b % 128 == 0, "block_b must be full batch or multiple of 128"

    eps = 1e-5
    # Fold BatchNorm1d (eval mode) into the preceding linear layer.
    s1 = params["bn1_gamma"] * jax.lax.rsqrt(params["bn1_var"] + eps)
    t1 = params["bn1_beta"] - params["bn1_mean"] * s1
    s2 = params["bn2_gamma"] * jax.lax.rsqrt(params["bn2_var"] + eps)
    t2 = params["bn2_beta"] - params["bn2_mean"] * s2

    # Transposed, BN-folded operands (batch-on-lanes layout).
    w1t = (params["w1"] * s1[None, :]).T.astype(jnp.bfloat16)         # [H, D]
    b1c = (params["b1"] * s1 + t1).reshape(H, 1).astype(jnp.float32)  # [H, 1]
    w2t = (params["w2"] * s2[None, :]).T.astype(jnp.bfloat16)         # [H, H]
    b2c = (params["b2"] * s2 + t2).reshape(H, 1).astype(jnp.float32)  # [H, 1]
    w3c = params["w3"].astype(jnp.float32)                            # [H, O] (O == 1)
    b3s = params["b3"].astype(jnp.float32).reshape(O)                 # (1,) -> SMEM
    xt = x.T.astype(jnp.bfloat16)                                     # [D, B]

    nb = pl.cdiv(B, block_b)
    const = lambda i: (0, 0)

    flops = 2 * B * (D * H + H * H + H * O)
    bytes_accessed = (B * D * 2 + H * D * 2 + H * H * 2
                      + 2 * H * 4 + H * 4 + 4 + B * O * 4)
    cost = pl.CostEstimate(flops=flops, transcendentals=0,
                           bytes_accessed=bytes_accessed)

    out = pl.pallas_call(
        _linsvm_kernel,
        out_shape=jax.ShapeDtypeStruct((O, B), jnp.float32),
        grid_spec=pltpu.PrefetchScalarGridSpec(
            num_scalar_prefetch=0,
            grid=(nb,),
            in_specs=[
                pl.BlockSpec((D, block_b), lambda i: (0, i)),            # x^T tile (bf16)
                pl.BlockSpec((H, D), const),                             # w1^T (BN folded, bf16)
                pl.BlockSpec((H, 1), const),                             # b1' column
                pl.BlockSpec((H, H), const),                             # w2^T (BN folded, bf16)
                pl.BlockSpec((H, 1), const),                             # b2' column
                pl.BlockSpec((H, O), const),                             # w3 column
                pl.BlockSpec(memory_space=pltpu.MemorySpace.SMEM),       # b3 scalar
            ],
            out_specs=pl.BlockSpec((O, block_b), lambda i: (0, i)),      # lane-dense row
        ),
        compiler_params=pltpu.CompilerParams(
            dimension_semantics=("parallel",),
            vmem_limit_bytes=_vmem_limit_bytes(block_b, D, H, O)),
        cost_estimate=cost,
    )(xt, w1t, b1c, w2t, b2c, w3c, b3s)

    # .squeeze() in the PyTorch module drops all size-1 dims (output_dim, and batch if B==1).
    return jnp.squeeze(out)


def init_params(key, input_dim, hidden_dim=128, output_dim=1):
    ks = jax.random.split(key, 8)

    def lin(k, fan_in, fan_out):
        # PyTorch nn.Linear default init: U(-1/sqrt(fan_in), 1/sqrt(fan_in))
        bound = 1.0 / jnp.sqrt(fan_in)
        kw, kb = jax.random.split(k)
        w = jax.random.uniform(kw, (fan_in, fan_out), jnp.float32, -bound, bound)
        b = jax.random.uniform(kb, (fan_out,), jnp.float32, -bound, bound)
        return w, b

    w1, b1 = lin(ks[0], input_dim, hidden_dim)
    w2, b2 = lin(ks[1], hidden_dim, hidden_dim)
    w3, b3 = lin(ks[2], hidden_dim, output_dim)
    # Non-trivial deterministic BN stats so the fold is exercised.
    bn1_gamma = 1.0 + 0.1 * jax.random.normal(ks[3], (hidden_dim,), jnp.float32)
    bn1_beta = 0.1 * jax.random.normal(ks[4], (hidden_dim,), jnp.float32)
    bn1_mean = 0.05 * jax.random.normal(ks[5], (hidden_dim,), jnp.float32)
    bn1_var = jnp.abs(1.0 + 0.1 * jax.random.normal(ks[6], (hidden_dim,), jnp.float32))
    bn2_gamma = 1.0 + 0.1 * jax.random.normal(ks[7], (hidden_dim,), jnp.float32)
    bn2_beta = jnp.zeros((hidden_dim,), jnp.float32)
    bn2_mean = jnp.zeros((hidden_dim,), jnp.float32)
    bn2_var = jnp.ones((hidden_dim,), jnp.float32)
    return dict(
        w1=w1, b1=b1, w2=w2, b2=b2, w3=w3, b3=b3,
        bn1_gamma=bn1_gamma, bn1_beta=bn1_beta, bn1_mean=bn1_mean, bn1_var=bn1_var,
        bn2_gamma=bn2_gamma, bn2_beta=bn2_beta, bn2_mean=bn2_mean, bn2_var=bn2_var,
    )


def _reference(x, params):
    """Pure-JAX f32 reference (eval-mode BN, identity dropout)."""
    eps = 1e-5
    h = x @ params["w1"] + params["b1"]
    h = (h - params["bn1_mean"]) / jnp.sqrt(params["bn1_var"] + eps) * params["bn1_gamma"] + params["bn1_beta"]
    h = jnp.maximum(h, 0.0)
    h = h @ params["w2"] + params["b2"]
    h = (h - params["bn2_mean"]) / jnp.sqrt(params["bn2_var"] + eps) * params["bn2_gamma"] + params["bn2_beta"]
    h = jnp.maximum(h, 0.0)
    return jnp.squeeze(h @ params["w3"] + params["b3"])


if __name__ == "__main__":
    key = jax.random.PRNGKey(0)
    kx, kp, kx2 = jax.random.split(key, 3)

    B, input_dim, hidden_dim, output_dim = 8, 16, 128, 1
    x = jax.random.normal(kx, (B, input_dim), jnp.float32)  # standardized-feature input
    params = init_params(kp, input_dim, hidden_dim, output_dim)

    out = jax.block_until_ready(linsvm_forward(x, params))
    ref = _reference(x, params)
    assert out.shape == (B,)
    # bf16-streamed inputs vs f32 reference -> modest tolerance
    assert jnp.allclose(out, ref, atol=2e-2, rtol=2e-2), (out, ref)

    # Multi-block grid with a ragged tail (exercises the tiled / partial-block path and,
    # on v7x, the >=2-block TensorCore-sharding policy).
    B2 = 300
    x2 = jax.random.normal(kx2, (B2, input_dim), jnp.float32)
    out2 = jax.block_until_ready(linsvm_forward(x2, params))
    ref2 = _reference(x2, params)
    assert out2.shape == (B2,)
    assert jnp.allclose(out2, ref2, atol=2e-2, rtol=2e-2), (out2, ref2)

    print("KERNEL_OK")
</pallas_src>

<mosaic_0001>
module attributes {stable_mosaic.version = 11 : i64} {
  func.func @_linsvm_kernel(%arg0: i32, %arg1: memref<16x8xbf16, #tpu.memory_space<vmem>>, %arg2: memref<128x16xbf16, #tpu.memory_space<vmem>>, %arg3: memref<128x1xf32, #tpu.memory_space<vmem>>, %arg4: memref<128x128xbf16, #tpu.memory_space<vmem>>, %arg5: memref<128x1xf32, #tpu.memory_space<vmem>>, %arg6: memref<128x1xf32, #tpu.memory_space<vmem>>, %arg7: memref<1xf32, #tpu.memory_space<smem>>, %arg8: memref<1x8xf32, #tpu.memory_space<vmem>>) attributes {dimension_semantics = [#tpu.dimension_semantics<parallel>], iteration_bounds = array<i64: 1>, scalar_prefetch = 0 : i64, scratch_operands = 0 : i64, tpu.core_type = #tpu.core_type<tc>, window_params = [{transform_indices = @transform_0, window_bounds = array<i64: 16, 8>}, {pipeline_mode = #tpu.pipeline_mode<synchronous>, transform_indices = @transform_1, window_bounds = array<i64: 128, 16>}, {pipeline_mode = #tpu.pipeline_mode<synchronous>, transform_indices = @transform_2, window_bounds = array<i64: 128, 1>}, {pipeline_mode = #tpu.pipeline_mode<synchronous>, transform_indices = @transform_3, window_bounds = array<i64: 128, 128>}, {pipeline_mode = #tpu.pipeline_mode<synchronous>, transform_indices = @transform_4, window_bounds = array<i64: 128, 1>}, {pipeline_mode = #tpu.pipeline_mode<synchronous>, transform_indices = @transform_5, window_bounds = array<i64: 128, 1>}, {transform_indices = @transform_6, window_bounds = array<i64: 1>}, {transform_indices = @transform_7, window_bounds = array<i64: 1, 8>}]} {
    %c0 = arith.constant 0 : index
    %c0_0 = arith.constant 0 : index
    %0 = vector.load %arg1[%c0, %c0_0] : memref<16x8xbf16, #tpu.memory_space<vmem>>, vector<16x8xbf16>
    %c0_1 = arith.constant 0 : index
    %c0_2 = arith.constant 0 : index
    %1 = vector.load %arg2[%c0_1, %c0_2] : memref<128x16xbf16, #tpu.memory_space<vmem>>, vector<128x16xbf16>
    %cst = arith.constant dense<0.000000e+00> : vector<128x8xf32>
    %2 = tpu.matmul %1, %0, %cst {dimension_numbers = #tpu.dot_dimension_numbers<[1], [0], [0], [1], [0, 0, 1, 1], [], []>} : vector<128x16xbf16>, vector<16x8xbf16>, vector<128x8xf32> -> vector<128x8xf32>
    %c0_3 = arith.constant 0 : index
    %c0_4 = arith.constant 0 : index
    %3 = vector.load %arg3[%c0_3, %c0_4] : memref<128x1xf32, #tpu.memory_space<vmem>>, vector<128x1xf32>
    %4 = vector.broadcast %3 : vector<128x1xf32> to vector<128x8xf32>
    %5 = arith.addf %2, %4 : vector<128x8xf32>
    %cst_5 = arith.constant 0.000000e+00 : f32
    %6 = vector.broadcast %cst_5 : f32 to vector<128x8xf32>
    %7 = arith.maximumf %5, %6 : vector<128x8xf32>
    %8 = arith.truncf %7 : vector<128x8xf32> to vector<128x8xbf16>
    %c0_6 = arith.constant 0 : index
    %c0_7 = arith.constant 0 : index
    %9 = vector.load %arg4[%c0_6, %c0_7] : memref<128x128xbf16, #tpu.memory_space<vmem>>, vector<128x128xbf16>
    %cst_8 = arith.constant dense<0.000000e+00> : vector<128x8xf32>
    %10 = tpu.matmul %9, %8, %cst_8 {dimension_numbers = #tpu.dot_dimension_numbers<[1], [0], [0], [1], [0, 0, 1, 1], [], []>} : vector<128x128xbf16>, vector<128x8xbf16>, vector<128x8xf32> -> vector<128x8xf32>
    %c0_9 = arith.constant 0 : index
    %c0_10 = arith.constant 0 : index
    %11 = vector.load %arg5[%c0_9, %c0_10] : memref<128x1xf32, #tpu.memory_space<vmem>>, vector<128x1xf32>
    %12 = vector.broadcast %11 : vector<128x1xf32> to vector<128x8xf32>
    %13 = arith.addf %10, %12 : vector<128x8xf32>
    %cst_11 = arith.constant 0.000000e+00 : f32
    %14 = vector.broadcast %cst_11 : f32 to vector<128x8xf32>
    %15 = arith.maximumf %13, %14 : vector<128x8xf32>
    %c0_12 = arith.constant 0 : index
    %c0_13 = arith.constant 0 : index
    %16 = vector.load %arg6[%c0_12, %c0_13] : memref<128x1xf32, #tpu.memory_space<vmem>>, vector<128x1xf32>
    %17 = vector.broadcast %16 : vector<128x1xf32> to vector<128x8xf32>
    %18 = arith.mulf %15, %17 : vector<128x8xf32>
    %cst_14 = arith.constant dense<0.000000e+00> : vector<8xf32>
    %19 = vector.multi_reduction <add>, %18, %cst_14 [0] : vector<128x8xf32> to vector<8xf32>
    %20 = vector.shape_cast %19 : vector<8xf32> to vector<1x8xf32>
    %c0_15 = arith.constant 0 : index
    %21 = memref.load %arg7[%c0_15] : memref<1xf32, #tpu.memory_space<smem>>
    %22 = vector.broadcast %21 : f32 to vector<1x8xf32>
    %23 = arith.addf %20, %22 : vector<1x8xf32>
    %c0_16 = arith.constant 0 : index
    %c0_17 = arith.constant 0 : index
    %24 = vector.load %arg8[%c0_16, %c0_17] : memref<1x8xf32, #tpu.memory_space<vmem>>, vector<1x8xf32>
    tpu.vector_store %arg8[%c0_16, %c0_17], %23 {strides = array<i32>} : memref<1x8xf32, #tpu.memory_space<vmem>>, vector<1x8xf32>,
    return
  }
  func.func @transform_0(%arg0: i32) -> (i32, i32) {
    %c0_i32 = arith.constant 0 : i32
    %c0_i32_0 = arith.constant 0 : i32
    return %c0_i32, %arg0 : i32, i32
  }
  func.func @transform_1(%arg0: i32) -> (i32, i32) {
    %c0_i32 = arith.constant 0 : i32
    %c0_i32_0 = arith.constant 0 : i32
    %c0_i32_1 = arith.constant 0 : i32
    return %c0_i32, %c0_i32_0 : i32, i32
  }
  func.func @transform_2(%arg0: i32) -> (i32, i32) {
    %c0_i32 = arith.constant 0 : i32
    %c0_i32_0 = arith.constant 0 : i32
    %c0_i32_1 = arith.constant 0 : i32
    return %c0_i32, %c0_i32_0 : i32, i32
  }
  func.func @transform_3(%arg0: i32) -> (i32, i32) {
    %c0_i32 = arith.constant 0 : i32
    %c0_i32_0 = arith.constant 0 : i32
    %c0_i32_1 = arith.constant 0 : i32
    return %c0_i32, %c0_i32_0 : i32, i32
  }
  func.func @transform_4(%arg0: i32) -> (i32, i32) {
    %c0_i32 = arith.constant 0 : i32
    %c0_i32_0 = arith.constant 0 : i32
    %c0_i32_1 = arith.constant 0 : i32
    return %c0_i32, %c0_i32_0 : i32, i32
  }
  func.func @transform_5(%arg0: i32) -> (i32, i32) {
    %c0_i32 = arith.constant 0 : i32
    %c0_i32_0 = arith.constant 0 : i32
    %c0_i32_1 = arith.constant 0 : i32
    return %c0_i32, %c0_i32_0 : i32, i32
  }
  func.func @transform_6(%arg0: i32) -> i32 {
    %c0_i32 = arith.constant 0 : i32
    %c0_i32_0 = arith.constant 0 : i32
    return %c0_i32 : i32
  }
  func.func @transform_7(%arg0: i32) -> (i32, i32) {
    %c0_i32 = arith.constant 0 : i32
    %c0_i32_0 = arith.constant 0 : i32
    return %c0_i32, %arg0 : i32, i32
  }
}

</mosaic_0001>

<bundles_post_ra>
// kernel: tpu_custom_call.1
= control target key start
LH: loop header
LB: loop body
LE: loop exit
PB: predicated region body
PF: predicated region fallthrough
CT: control target
= control target key end

     0   :  { %vm189_vm0 = vcmask 130048   ;;  %v936_v2 = vmov 0   ;;  %s1218_s0 = inlined_call_operand.vmem [shape: bf16[16,8], index: 0, kind: input, shape index: {}]   ;;  %s1219_s1 = inlined_call_operand.vmem [shape: bf16[128,16], index: 1, kind: input, shape index: {}]   ;;  %s1220_s2 = inlined_call_operand.vmem [shape: f32[128,1], index: 2, kind: input, shape index: {}]   ;;  %s1221_s3 = inlined_call_operand.vmem [shape: bf16[128,128], index: 3, kind: input, shape index: {}]   ;;  %s1222_s4 = inlined_call_operand.vmem [shape: f32[128,1], index: 4, kind: input, shape index: {}]   ;;  %s1223_s5 = inlined_call_operand.vmem [shape: f32[128,1], index: 5, kind: input, shape index: {}]   ;;  %s1224_s6 = inlined_call_operand.<no memory space> [shape: f32[1], index: 6, kind: input, shape index: {}]   ;;  %s1225_s7 = inlined_call_operand.hbm [shape: f32[1,8], index: 7, kind: output, shape index: {}]  }
   0x1   :  { %v897_v0 = vld [vmem:[%s1218_s0] sm:$0xff]   ;;  %895 = vset.pattern.permute.xlu0 %v936_v2  ;;  %v899_v3 = vld [vmem:[%s1219_s1 + $0x8] sm:$0xff]   ;;  %v61_v4 = vld [vmem:[%s1220_s2 + $0x70] sm:$0xff]  ;;  %896 = vset.pattern.permute.xlu1 %v936_v2 }
   0x2   :  { %v898_v1 = vld [vmem:[%s1219_s1] sm:$0xff]   ;;  %827 = vmatprep.subr.bf16.mxu0 %v897_v0  ;;  %135 = vperm.xlu0 %895, %v61_v4   ;;  %v900_v6 = vld [vmem:[%s1219_s1 + $0x10] sm:$0xff]   ;;  %v62_v7 = vld [vmem:[%s1220_s2 + $0x78] sm:$0xff] }
   0x3   :  { %828 = vmatpush3.bf16.msra.mxu0 %v897_v0  ;;  %829 = vmatprep.mubr.msk.bf16.mxu0 %vm189_vm0, %v898_v1  ;;  %v59_v5 = vld [vmem:[%s1220_s2 + $0x60] sm:$0xff]  ;;  %v60_v8 = vld [vmem:[%s1220_s2 + $0x68] sm:$0xff]  ;;  %v57_v9 = vld [vmem:[%s1220_s2 + $0x50] sm:$0xff] }
   0x4   :  { %125 = vperm.xlu1 %896, %v59_v5   ;;  %v901_v10 = vld [vmem:[%s1219_s1 + $0x18] sm:$0xff]   ;;  %v902_v12 = vld [vmem:[%s1219_s1 + $0x20] sm:$0xff]   ;;  %v56_v14 = vld [vmem:[%s1220_s2 + $0x48] sm:$0xff] }
   0x5   :  { %v58_v11 = vld [vmem:[%s1220_s2 + $0x58] sm:$0xff]  ;;  %v55_v13 = vld [vmem:[%s1220_s2 + $0x40] sm:$0xff]  ;;  %v53_v15 = vld [vmem:[%s1220_s2 + $0x30] sm:$0xff] }
   0x6   :  { %830 = vmatmul.mubr.msk.bf16.vlgmr.msra.gmra.mxu0 %vm189_vm0, %v899_v3  ;;  %140 = vperm.xlu0 %895, %v62_v7   ;;  %v903_v16 = vld [vmem:[%s1219_s1 + $0x28] sm:$0xff]   ;;  %v54_v17 = vld [vmem:[%s1220_s2 + $0x38] sm:$0xff]  ;;  %v904_v18 = vld [vmem:[%s1219_s1 + $0x30] sm:$0xff]  }
   0x7   :  { %833 = vmatprep.mubr.msk.bf16.mxu0 %vm189_vm0, %v900_v6  ;;  %v51_v19 = vld [vmem:[%s1220_s2 + $0x20] sm:$0xff]  ;;  %v52_v20 = vld [vmem:[%s1220_s2 + $0x28] sm:$0xff]  ;;  %v905_v21 = vld [vmem:[%s1219_s1 + $0x38] sm:$0xff]  }
   0x8   :  { %130 = vperm.xlu1 %896, %v60_v8   ;;  %v49_v22 = vld [vmem:[%s1220_s2 + $0x10] sm:$0xff]  ;;  %v50_v23 = vld [vmem:[%s1220_s2 + $0x18] sm:$0xff]  ;;  %v47_v24 = vld [vmem:[%s1220_s2] sm:$0xff] }
   0x9   :  { %v48_v25 = vld [vmem:[%s1220_s2 + $0x8] sm:$0xff] }
   0xa   :  { %115 = vperm.xlu0 %895, %v57_v9  }
   0xc   :  { %120 = vperm.xlu1 %896, %v58_v11  }
   0xe   :  { %834 = vmatmul.mubr.msk.bf16.gmra.mxu0 %vm189_vm0, %v901_v10  ;;  %105 = vperm.xlu0 %895, %v55_v13  }
   0xf   :  { %837 = vmatprep.mubr.msk.bf16.mxu0 %vm189_vm0, %v902_v12 }
  0x10   :  { %110 = vperm.xlu1 %896, %v56_v14  }
  0x12   :  { %95 = vperm.xlu0 %895, %v53_v15  }
  0x14   :  { %100 = vperm.xlu1 %896, %v54_v17  }
  0x16   :  { %838 = vmatmul.mubr.msk.bf16.gmra.mxu0 %vm189_vm0, %v903_v16  ;;  %85 = vperm.xlu0 %895, %v51_v19  }
  0x17   :  { %841 = vmatprep.mubr.msk.bf16.mxu0 %vm189_vm0, %v904_v18 }
  0x18   :  { %90 = vperm.xlu1 %896, %v52_v20  }
  0x1a   :  { %75 = vperm.xlu0 %895, %v49_v22  }
  0x1c   :  { %80 = vperm.xlu1 %896, %v50_v23  }
  0x1e   :  { %842 = vmatmul.mubr.msk.bf16.gmra.mxu0 %vm189_vm0, %v905_v21 }
  0x1f   :  { %13 = vsyncpa [#allocation4], 0  ;;  %65 = vperm.xlu0 %895, %v47_v24   ;;  %v351_v26 = vld [vmem:[%s1222_s4] sm:$0xff]  ;;  %v352_v27 = vld [vmem:[%s1222_s4 + $0x8] sm:$0xff]  ;;  %vm720_vm1 = vcmask 64512   ;;  %s937_s26 = smov [#allocation3]  }
  0x20   :  { %70 = vperm.xlu1 %896, %v48_v25   ;;  %v353_v28 = vld [vmem:[%s1222_s4 + $0x10] sm:$0xff]  ;;  %v354_v29 = vld [vmem:[%s1222_s4 + $0x18] sm:$0xff]  ;;  %v355_v30 = vld [vmem:[%s1222_s4 + $0x20] sm:$0xff]  ;;  %s769_s27 = sshll.u32 %s937_s26, 4  ;;  %vm761_vm2 = vcmask 57344   ;;  %s770_s27 = int_to_ptr.vmem [resolvable:$true] %s769_s27 }
  0x21   :  { %v608_v31 = vld [vmem:[%s1223_s5] sm:$0xff]  ;;  %v609_v32 = vld [vmem:[%s1223_s5 + $0x8] sm:$0xff]  ;;  %v610_v33 = vld [vmem:[%s1223_s5 + $0x10] sm:$0xff]  ;;  %s914_s28 = scalar_lea.vmem %s770_s27, 16  ;;  %s918_s29 = scalar_lea.vmem %s770_s27, 32 }
  0x22   :  { %v356_v34 = vld [vmem:[%s1222_s4 + $0x28] sm:$0xff]  ;;  %v611_v35 = vld [vmem:[%s1223_s5 + $0x18] sm:$0xff]  ;;  %v357_v36 = vld [vmem:[%s1222_s4 + $0x30] sm:$0xff]  ;;  %p915_p0 = scmp.ne.s32.totalorder %s770_s27, %s914_s28  ;;  %p919_p1 = scmp.lt.s32.totalorder %s770_s27, %s770_s27 }
  0x23   :  { %369 = vperm.xlu0 %895, %v351_v26   ;;  %v612_v37 = vld [vmem:[%s1223_s5 + $0x20] sm:$0xff]  ;;  %v358_v38 = vld [vmem:[%s1222_s4 + $0x38] sm:$0xff]  ;;  %v613_v39 = vld [vmem:[%s1223_s5 + $0x28] sm:$0xff]  ;;  %p920_p2 = scmp.lt.s32.totalorder %s918_s29, %s914_s28 }
  0x24   :  { %374 = vperm.xlu1 %896, %v352_v27   ;;  %v359_v40 = vld [vmem:[%s1222_s4 + $0x40] sm:$0xff]  ;;  %v614_v41 = vld [vmem:[%s1223_s5 + $0x30] sm:$0xff]  ;;  %v360_v42 = vld [vmem:[%s1222_s4 + $0x48] sm:$0xff] }
  0x25   :  { %v615_v43 = vld [vmem:[%s1223_s5 + $0x38] sm:$0xff]  ;;  %v361_v44 = vld [vmem:[%s1222_s4 + $0x50] sm:$0xff]  ;;  %v616_v45 = vld [vmem:[%s1223_s5 + $0x40] sm:$0xff]  ;;  %p921_p3 = por %p920_p2, %p919_p1 }
  0x26   :  { %v362_v46 = vld [vmem:[%s1222_s4 + $0x58] sm:$0xff]  ;;  %v617_v47 = vld [vmem:[%s1223_s5 + $0x48] sm:$0xff]  ;;  %v363_v48 = vld [vmem:[%s1222_s4 + $0x60] sm:$0xff] }
  0x27   :  { %379 = vperm.xlu0 %895, %v353_v28   ;;  %v618_v49 = vld [vmem:[%s1223_s5 + $0x50] sm:$0xff]  ;;  %v364_v50 = vld [vmem:[%s1222_s4 + $0x68] sm:$0xff]  ;;  %v619_v51 = vld [vmem:[%s1223_s5 + $0x58] sm:$0xff]  ;;  %p922_p4 = pnand %p921_p3, %p915_p0 }
  0x28   :  { %384 = vperm.xlu1 %896, %v354_v29   ;;  %v365_v52 = vld [vmem:[%s1222_s4 + $0x70] sm:$0xff]  ;;  %v620_v53 = vld [vmem:[%s1223_s5 + $0x60] sm:$0xff]  ;;  %v366_v54 = vld [vmem:[%s1222_s4 + $0x78] sm:$0xff] }
  0x29   :  { %v621_v55 = vld [vmem:[%s1223_s5 + $0x68] sm:$0xff]  ;;  %v622_v56 = vld [vmem:[%s1223_s5 + $0x70] sm:$0xff]  ;;  %v623_v57 = vld [vmem:[%s1223_s5 + $0x78] sm:$0xff] }
  0x2a   :  { %v906_v58 = vld [vmem:[%s1221_s3] sm:$0xff]   ;;  %v907_v59 = vld [vmem:[%s1221_s3 + $0x10] sm:$0xff]  }
  0x2b   :  { %389 = vperm.xlu0 %895, %v355_v30   ;;  %861 = vmatprep.mubr.bf16.mxu0 %v906_v58 }
  0x2c   :  { %626 = vperm.xlu1 %896, %v608_v31   ;;  %865 = vmatprep.mubr.bf16.mxu1 %v907_v59 }
  0x2f   :  { %631 = vperm.xlu0 %895, %v609_v32  }
  0x30   :  { %636 = vperm.xlu1 %896, %v610_v33  }
  0x33   :  { %394 = vperm.xlu0 %895, %v356_v34  }
  0x34   :  { %641 = vperm.xlu1 %896, %v611_v35  }
  0x37   :  { %399 = vperm.xlu0 %895, %v357_v36  }
  0x38   :  { %646 = vperm.xlu1 %896, %v612_v37  }
  0x3b   :  { %404 = vperm.xlu0 %895, %v358_v38  }
  0x3c   :  { %651 = vperm.xlu1 %896, %v613_v39  }
  0x3f   :  { %409 = vperm.xlu0 %895, %v359_v40  }
  0x40   :  { %656 = vperm.xlu1 %896, %v614_v41  }
  0x43   :  { %414 = vperm.xlu0 %895, %v360_v42  }
  0x44   :  { %661 = vperm.xlu1 %896, %v615_v43  }
  0x47   :  { %419 = vperm.xlu0 %895, %v361_v44  }
  0x48   :  { %666 = vperm.xlu1 %896, %v616_v45  }
  0x4b   :  { %424 = vperm.xlu0 %895, %v362_v46  }
  0x4c   :  { %671 = vperm.xlu1 %896, %v617_v47  }
  0x4f   :  { %429 = vperm.xlu0 %895, %v363_v48  }
  0x50   :  { %676 = vperm.xlu1 %896, %v618_v49  }
  0x53   :  { %434 = vperm.xlu0 %895, %v364_v50  }
  0x54   :  { %681 = vperm.xlu1 %896, %v619_v51  }
  0x57   :  { %439 = vperm.xlu0 %895, %v365_v52  }
  0x58   :  { %686 = vperm.xlu1 %896, %v620_v53  }
  0x5b   :  { %444 = vperm.xlu0 %895, %v366_v54  }
  0x5c   :  { %691 = vperm.xlu1 %896, %v621_v55  }
  0x5f   :  { %696 = vperm.xlu0 %895, %v622_v56  }
  0x60   :  { %701 = vperm.xlu1 %896, %v623_v57  }
  0x7d   :  { %v136_v2 = vpop.permute.xlu0 %135 }
  0x7f   :  { %v126_v0 = vpop.permute.xlu1 %125 }
  0x81   :  { %v141_v7 = vpop.permute.xlu0 %140 }
  0x83   :  { %v131_v5 = vpop.permute.xlu1 %130 }
  0x85   :  { %v116_v12 = vpop.permute.xlu0 %115 }
  0x87   :  { %v121_v10 = vpop.permute.xlu1 %120 }
  0x89   :  { %v106_v18 = vpop.permute.xlu0 %105 }
  0x8b   :  { %v111_v15 = vpop.permute.xlu1 %110 }
  0x8d   :  { %v96_v32 = vpop.permute.xlu0 %95 }
  0x8f   :  { %v101_v27 = vpop.permute.xlu1 %100 }
  0x91   :  { %v86_v42 = vpop.permute.xlu0 %85 }
  0x93   :  { %v91_v38 = vpop.permute.xlu1 %90 }
  0x95   :  { %v76_v51 = vpop.permute.xlu0 %75 }
  0x97   :  { %v81_v48 = vpop.permute.xlu1 %80 }
  0x9b   :  { %v71_v57 = vpop.permute.xlu1 %70 }
  0xc6   :  { %v1163_v60 = vpop.f32.mrf.mxu0 }
  0xc7   :  { %v257_v55 = vadd.f32 %v1163_v60, %v76_v51 }
  0xc8   :  { %v1165_v61 = vpop.f32.mrf.mxu0 }
  0xca   :  { %v1167_v62 = vpop.f32.mrf.mxu0 }
  0xcb   :  { %v260_v52 = vadd.f32 %v1167_v62, %v81_v48 }
  0xcc   :  { %v1169_v63 = vpop.f32.mrf.mxu0 }
  0xcd   :  { %v314_v58 = vmax.f32 %v260_v52, 0.0  ;;  %v252_v59 = vadd.f32 %v1169_v63, %v71_v57  ;;  %v908_v63 = vld [vmem:[%s1221_s3 + $0x8] sm:$0xff]  }
  0xce   :  { %v835_v1 = vpop.f32.mrf.mxu0 }
  0xcf   :  { %v273_v43 = vadd.f32 %v835_v1, %v96_v32  ;;  %v66_v1 = vpop.permute.xlu0 %65 }
  0xd0   :  { %v264_v3 = vpop.f32.mrf.mxu0  ;;  %v249_v62 = vadd.f32 %v1165_v61, %v66_v1  ;;  %v909_v61 = vld [vmem:[%s1221_s3 + $0x18] sm:$0xff]  }
  0xd1   :  { %v317_v49 = vmax.f32 %v273_v43, 0.0  ;;  %v265_v50 = vadd.f32 %v264_v3, %v86_v42 }
  0xd2   :  { %v836_v4 = vpop.f32.mrf.mxu0  ;;  %v311_v60 = vmax.f32 %v249_v62, 0.0 }
  0xd3   :  { %v276_v39 = vadd.f32 %v836_v4, %v101_v27  ;;  %v315_v56 = vmax.f32 %v265_v50, 0.0  ;;  %v312_v4 = vmax.f32 %v252_v59, 0.0 }
  0xd4   :  { %v267_v6 = vpop.f32.mrf.mxu0 }
  0xd5   :  { %v318_v45 = vmax.f32 %v276_v39, 0.0  ;;  %v268_v46 = vadd.f32 %v267_v6, %v91_v38  ;;  %v910_v6 = vld [vmem:[%s1221_s3 + $0x20] sm:$0xff]  }
  0xd6   :  { %v839_v8 = vpop.f32.mrf.mxu0 }
  0xd7   :  { %v289_v28 = vadd.f32 %v839_v8, %v116_v12  ;;  %v330_v53 = vpack.c.bf16 %v318_v45, %v317_v49  ;;  %v316_v54 = vmax.f32 %v268_v46, 0.0  ;;  %v912_v8 = vld [vmem:[%s1221_s3 + $0x30] sm:$0xff]  }
  0xd8   :  { %v280_v9 = vpop.f32.mrf.mxu0 }
  0xd9   :  { %v321_v36 = vmax.f32 %v289_v28, 0.0  ;;  %v281_v37 = vadd.f32 %v280_v9, %v106_v18  ;;  %v913_v9 = vld [vmem:[%s1221_s3 + $0x38] sm:$0xff]  }
  0xda   :  { %v840_v11 = vpop.f32.mrf.mxu0 }
  0xdb   :  { %v292_v23 = vadd.f32 %v840_v11, %v121_v10  ;;  %v319_v44 = vmax.f32 %v281_v37, 0.0  ;;  %v370_v10 = vpop.permute.xlu0 %369  ;;  %v375_v11 = vpop.permute.xlu1 %374 }
  0xdc   :  { %v283_v13 = vpop.f32.mrf.mxu0 }
  0xdd   :  { %v322_v33 = vmax.f32 %v292_v23, 0.0  ;;  %v284_v34 = vadd.f32 %v283_v13, %v111_v15 }
  0xde   :  { %v843_v14 = vpop.f32.mrf.mxu0 }
  0xdf   :  { %v305_v17 = vadd.f32 %v843_v14, %v136_v2  ;;  %v332_v40 = vpack.c.bf16 %v322_v33, %v321_v36  ;;  %v320_v41 = vmax.f32 %v284_v34, 0.0  ;;  %v313_v2 = vmax.f32 %v257_v55, 0.0  ;;  %v380_v12 = vpop.permute.xlu0 %379  ;;  %v385_v13 = vpop.permute.xlu1 %384 }
  0xe0   :  { %v296_v16 = vpop.f32.mrf.mxu0 }
  0xe1   :  { %v297_v20 = vadd.f32 %v296_v16, %v126_v0  ;;  %v325_v24 = vmax.f32 %v305_v17, 0.0  ;;  %v331_v47 = vpack.c.bf16 %v320_v41, %v319_v44  ;;  %v329_v0 = vpack.c.bf16 %v316_v54, %v315_v56 }
  0xe2   :  { %v844_v19 = vpop.f32.mrf.mxu0  ;;  %v328_v3 = vpack.c.bf16 %v314_v58, %v313_v2 }
  0xe3   :  { %v308_v21 = vadd.f32 %v844_v19, %v141_v7  ;;  %v323_v29 = vmax.f32 %v297_v20, 0.0  ;;  %v911_v7 = vld [vmem:[%s1221_s3 + $0x28] sm:$0xff]   ;;  %v390_v14 = vpop.permute.xlu0 %389  ;;  %v627_v15 = vpop.permute.xlu1 %626 }
  0xe4   :  { %v299_v22 = vpop.f32.mrf.mxu0 }
  0xe5   :  { %v326_v25 = vmax.f32 %v308_v21, 0.0  ;;  %v300_v26 = vadd.f32 %v299_v22, %v131_v5  ;;  %v327_v5 = vpack.c.bf16 %v312_v4, %v311_v60 }
  0xe7   :  { %v334_v30 = vpack.c.bf16 %v326_v25, %v325_v24  ;;  %v324_v31 = vmax.f32 %v300_v26, 0.0  ;;  %v632_v16 = vpop.permute.xlu0 %631  ;;  %v637_v17 = vpop.permute.xlu1 %636 }
  0xe9   :  { %v333_v35 = vpack.c.bf16 %v324_v31, %v323_v29  ;;  %845 = vmatprep.subr.bf16.mxu0 %v334_v30  ;;  %877 = vmatprep.subr.bf16.mxu1 %v334_v30 }
  0xea   :  { %846 = vmatpush3.bf16.msra.mxu0 %v334_v30  ;;  %885 = vmatpush3.bf16.msra.mxu1 %v334_v30 }
  0xeb   :  { %847 = vmatprep.subr.bf16.mxu0 %v333_v35  ;;  %878 = vmatprep.subr.bf16.mxu1 %v333_v35  ;;  %v395_v18 = vpop.permute.xlu0 %394  ;;  %v642_v19 = vpop.permute.xlu1 %641 }
  0xee   :  { %848 = vmatpush3.bf16.msra.mxu0 %v333_v35  ;;  %886 = vmatpush3.bf16.msra.mxu1 %v333_v35 }
  0xef   :  { %849 = vmatprep.subr.bf16.mxu0 %v332_v40  ;;  %879 = vmatprep.subr.bf16.mxu1 %v332_v40  ;;  %v400_v20 = vpop.permute.xlu0 %399  ;;  %v647_v21 = vpop.permute.xlu1 %646 }
  0xf2   :  { %850 = vmatpush3.bf16.msra.mxu0 %v332_v40  ;;  %887 = vmatpush3.bf16.msra.mxu1 %v332_v40 }
  0xf3   :  { %851 = vmatprep.subr.bf16.mxu0 %v331_v47  ;;  %880 = vmatprep.subr.bf16.mxu1 %v331_v47  ;;  %v405_v22 = vpop.permute.xlu0 %404  ;;  %v652_v23 = vpop.permute.xlu1 %651 }
  0xf6   :  { %852 = vmatpush3.bf16.msra.mxu0 %v331_v47  ;;  %888 = vmatpush3.bf16.msra.mxu1 %v331_v47 }
  0xf7   :  { %853 = vmatprep.subr.bf16.mxu0 %v330_v53  ;;  %881 = vmatprep.subr.bf16.mxu1 %v330_v53  ;;  %v410_v24 = vpop.permute.xlu0 %409  ;;  %v657_v25 = vpop.permute.xlu1 %656 }
  0xfa   :  { %854 = vmatpush3.bf16.msra.mxu0 %v330_v53  ;;  %889 = vmatpush3.bf16.msra.mxu1 %v330_v53 }
  0xfb   :  { %855 = vmatprep.subr.bf16.mxu0 %v329_v0  ;;  %882 = vmatprep.subr.bf16.mxu1 %v329_v0  ;;  %v415_v26 = vpop.permute.xlu0 %414  ;;  %v662_v27 = vpop.permute.xlu1 %661 }
  0xfe   :  { %856 = vmatpush3.bf16.msra.mxu0 %v329_v0  ;;  %890 = vmatpush3.bf16.msra.mxu1 %v329_v0 }
  0xff   :  { %857 = vmatprep.subr.bf16.mxu0 %v328_v3  ;;  %883 = vmatprep.subr.bf16.mxu1 %v328_v3  ;;  %v420_v28 = vpop.permute.xlu0 %419  ;;  %v1193_v31 = vpop.permute.xlu1 %666 }
 0x102   :  { %858 = vmatpush3.bf16.msra.mxu0 %v328_v3  ;;  %891 = vmatpush3.bf16.msra.mxu1 %v328_v3 }
 0x103   :  { %859 = vmatprep.subr.bf16.mxu0 %v327_v5  ;;  %884 = vmatprep.subr.bf16.mxu1 %v327_v5  ;;  %v425_v38 = vpop.permute.xlu0 %424  ;;  %v672_v43 = vpop.permute.xlu1 %671 }
 0x106   :  { %860 = vmatpush3.bf16.msra.mxu0 %v327_v5  ;;  %892 = vmatpush3.bf16.msra.mxu1 %v327_v5 }
 0x107   :  { %v430_v53 = vpop.permute.xlu0 %429  ;;  %v677_v59 = vpop.permute.xlu1 %676 }
 0x109   :  { %862 = vmatmul.mubr.bf16.vlgmr.msra.gmra.mxu0 %v908_v63  ;;  %866 = vmatmul.mubr.bf16.vlgmr.msra.gmra.mxu1 %v909_v61 }
 0x10a   :  { %869 = vmatprep.mubr.bf16.mxu1 %v910_v6 }
 0x111   :  { %870 = vmatmul.mubr.bf16.gmra.mxu1 %v911_v7 }
 0x112   :  { %873 = vmatprep.mubr.bf16.mxu1 %v912_v8  ;;  %v435_v8 = vpop.permute.xlu0 %434 }
 0x119   :  { %874 = vmatmul.mubr.bf16.gmra.mxu1 %v913_v9 }
 0x1c9   :  { %v863_v29 = vpop.f32.mrf.mxu0  ;;  %v867_v30 = vpop.f32.mrf.mxu1 }
 0x1ca   :  { %v538_v35 = vadd.f32 %v863_v29, %v380_v12  ;;  %v554_v55 = vadd.f32 %v867_v30, %v400_v20 }
 0x1cb   :  { %v529_v32 = vpop.f32.mrf.mxu0  ;;  %v545_v33 = vpop.f32.mrf.mxu1 }
 0x1cc   :  { %v530_v34 = vadd.f32 %v529_v32, %v370_v10  ;;  %v594_v44 = vmax.f32 %v538_v35, 0.0  ;;  %v546_v45 = vadd.f32 %v545_v33, %v390_v14  ;;  %v598_v63 = vmax.f32 %v554_v55, 0.0  ;;  %v440_v33 = vpop.permute.xlu0 %439 }
 0x1cd   :  { %v864_v36 = vpop.f32.mrf.mxu0  ;;  %v868_v37 = vpop.f32.mrf.mxu1 }
 0x1ce   :  { %v592_v39 = vmax.f32 %v530_v34, 0.0  ;;  %v541_v40 = vadd.f32 %v864_v36, %v385_v13  ;;  %v706_v54 = vmul.f32 %v637_v17, %v594_v44  ;;  %v596_v56 = vmax.f32 %v546_v45, 0.0 }
 0x1cf   :  { %v532_v41 = vpop.f32.mrf.mxu0  ;;  %v548_v42 = vpop.f32.mrf.mxu1  ;;  %v557_v0 = vadd.f32 %v868_v37, %v405_v22  ;;  %v710_v17 = vmul.f32 %v657_v25, %v598_v63 }
 0x1d0   :  { %v533_v46 = vadd.f32 %v532_v41, %v375_v11  ;;  %v704_v48 = vmul.f32 %v627_v15, %v592_v39  ;;  %v595_v49 = vmax.f32 %v541_v40, 0.0  ;;  %v549_v51 = vadd.f32 %v548_v42, %v395_v18  ;;  %v682_v15 = vpop.permute.xlu1 %681 }
 0x1d1   :  { %v871_v47 = vpop.f32.mrf.mxu1  ;;  %v724_v5 = vsel %vm720_vm1, %v706_v54, 0.0  ;;  %v708_v61 = vmul.f32 %v647_v21, %v596_v56  ;;  %v599_v11 = vmax.f32 %v557_v0, 0.0 }
 0x1d2   :  { %v593_v50 = vmax.f32 %v533_v46, 0.0  ;;  %v721_v1 = vsel %vm720_vm1, %v704_v48, 0.0  ;;  %v707_v2 = vmul.f32 %v642_v19, %v595_v49  ;;  %v597_v3 = vmax.f32 %v549_v51, 0.0 }
 0x1d3   :  { %v561_v52 = vpop.f32.mrf.mxu1  ;;  %v728_v18 = vsel %vm720_vm1, %v708_v61, 0.0  ;;  %v570_v19 = vadd.f32 %v871_v47, %v420_v28  ;;  %v711_v21 = vmul.f32 %v662_v27, %v599_v11  ;;  %v445_v47 = vpop.permute.xlu0 %444 }
 0x1d4   :  { %v705_v57 = vmul.f32 %v632_v16, %v593_v50  ;;  %v562_v6 = vadd.f32 %v561_v52, %v410_v24  ;;  %v726_v10 = vsel %vm720_vm1, %v707_v2, 0.0  ;;  %v709_v12 = vmul.f32 %v652_v23, %v597_v3  ;;  %v687_v37 = vpop.permute.xlu1 %686 }
 0x1d5   :  { %v872_v58 = vpop.f32.mrf.mxu1  ;;  %v732_v23 = vsel %vm720_vm1, %v710_v17, 0.0  ;;  %v734_v28 = vsel %vm720_vm1, %v711_v21, 0.0 }
 0x1d6   :  { %v722_v62 = vsel %vm720_vm1, %v705_v57, 0.0  ;;  %v600_v20 = vmax.f32 %v562_v6, 0.0  ;;  %v730_v24 = vsel %vm720_vm1, %v709_v12, 0.0  ;;  %v573_v30 = vadd.f32 %v872_v58, %v425_v38 }
 0x1d7   :  { %v564_v4 = vpop.f32.mrf.mxu1  ;;  %v723_v60 = vadd.f32 %v722_v62, %v721_v1  ;;  %v697_v0 = vpop.permute.xlu0 %696 }
 0x1d8   :  { %v565_v13 = vadd.f32 %v564_v4, %v415_v26  ;;  %v602_v26 = vmax.f32 %v570_v19, 0.0  ;;  %v712_v36 = vmul.f32 %v1193_v31, %v600_v20  ;;  %v603_v40 = vmax.f32 %v573_v30, 0.0  ;;  %v692_v52 = vpop.permute.xlu1 %691 }
 0x1d9   :  { %v875_v7 = vpop.f32.mrf.mxu1  ;;  %v725_v9 = vadd.f32 %v724_v5, %v723_v60 }
 0x1da   :  { %v601_v32 = vmax.f32 %v565_v13, 0.0  ;;  %v714_v44 = vmul.f32 %v677_v59, %v602_v26  ;;  %v736_v38 = vsel %vm720_vm1, %v712_v36, 0.0  ;;  %v586_v45 = vadd.f32 %v875_v7, %v440_v33 }
 0x1db   :  { %v577_v14 = vpop.f32.mrf.mxu1  ;;  %v727_v16 = vadd.f32 %v726_v10, %v725_v9  ;;  %v715_v49 = vmul.f32 %v682_v15, %v603_v40 }
 0x1dc   :  { %v578_v25 = vadd.f32 %v577_v14, %v430_v53  ;;  %v713_v41 = vmul.f32 %v672_v43, %v601_v32  ;;  %v740_v54 = vsel %vm720_vm1, %v714_v44, 0.0  ;;  %v606_v55 = vmax.f32 %v586_v45, 0.0  ;;  %v702_v3 = vpop.permute.xlu1 %701 }
 0x1dd   :  { %v876_v22 = vpop.f32.mrf.mxu1  ;;  %v729_v29 = vadd.f32 %v728_v18, %v727_v16  ;;  %v742_v57 = vsel %vm720_vm1, %v715_v49, 0.0  ;;  %v759_v14 = vstv %s1224_s6 }
 0x1de   :  { %v604_v46 = vmax.f32 %v578_v25, 0.0  ;;  %v738_v50 = vsel %vm720_vm1, %v713_v41, 0.0  ;;  %v589_v31 = vadd.f32 %v876_v22, %v445_v47  ;;  %v718_v2 = vmul.f32 %v697_v0, %v606_v55 }
 0x1df   :  { %v731_v34 = vadd.f32 %v730_v24, %v729_v29  ;;  %v580_v35 = vpop.f32.mrf.mxu1 }
 0x1e0   :  { %v581_v27 = vadd.f32 %v580_v35, %v435_v8  ;;  %v716_v43 = vmul.f32 %v687_v37, %v604_v46  ;;  %v607_v58 = vmax.f32 %v589_v31, 0.0  ;;  %v748_v61 = vsel %vm720_vm1, %v718_v2, 0.0 }
 0x1e1   :  { %v733_v39 = vadd.f32 %v732_v23, %v731_v34 }
 0x1e2   :  { %v605_v51 = vmax.f32 %v581_v27, 0.0  ;;  %v744_v62 = vsel %vm720_vm1, %v716_v43, 0.0  ;;  %v719_v60 = vmul.f32 %v702_v3, %v607_v58 }
 0x1e3   :  { %v735_v42 = vadd.f32 %v734_v28, %v733_v39 }
 0x1e4   :  { %v717_v59 = vmul.f32 %v692_v52, %v605_v51  ;;  %v750_v7 = vsel %vm720_vm1, %v719_v60, 0.0 }
 0x1e5   :  { %v737_v48 = vadd.f32 %v736_v38, %v735_v42 }
 0x1e6   :  { %v746_v5 = vsel %vm720_vm1, %v717_v59, 0.0 }
 0x1e7   :  { %v739_v53 = vadd.f32 %v738_v50, %v737_v48 }
 0x1e9   :  { %v741_v56 = vadd.f32 %v740_v54, %v739_v53 }
 0x1eb   :  { %v743_v1 = vadd.f32 %v742_v57, %v741_v56 }
 0x1ed   :  { %v745_v4 = vadd.f32 %v744_v62, %v743_v1 }
 0x1ef   :  { %v747_v63 = vadd.f32 %v746_v5, %v745_v4 }
 0x1f1   :  { %v749_v6 = vadd.f32 %v748_v61, %v747_v63 }
 0x1f3   :  { %v751_v8 = vadd.f32 %v750_v7, %v749_v6 }
 0x1f5   :  { %v752_v9 = vrot.slane %v751_v8, 4 }
 0x1f7   :  { %v753_v10 = vadd.f32 %v752_v9, %v751_v8 }
 0x1f9   :  { %v754_v11 = vrot.slane %v753_v10, 2 }
 0x1fb   :  { %v755_v12 = vadd.f32 %v754_v11, %v753_v10 }
 0x1fd   :  { %v756_v13 = vrot.slane %v755_v12, 1 }
 0x1ff   :  { %v757_v15 = vadd.f32 %v756_v13, %v755_v12 }
 0x201   :  { %v760_v16 = vadd.f32 %v759_v14, %v757_v15 }
 0x203   :  { %762 = vst.msk [vmem:[#allocation3] sm:$0x1] %vm761_vm2, %v760_v16 }
 0x204   :  { %925 = shalt.err (!%p922_p4)
}
 0x205   :  { %772 = dma.vmem_to_hbm [thread:$0]  %s770_s27, 16, %s1225_s7, [#allocation4]  }
 0x206   :  { %934 = dma.done.wait [#allocation4], 16  }
 0x207   :  { %935 = vsyncadd [#allocation4], 4294967280 }
 0x208   :  { %776 = vsyncpa [#allocation4], 1 }

</bundles_post_ra>
